<compile_context>
chip_gen: v7x
topology: tpu7x:2x2x1
jax: 0.10.0
libtpu: 0.0.40
codegen_flags: <defaults>
</compile_context>

<pallas_src>
import jax
import jax.numpy as jnp
from jax.experimental import pallas as pl
from jax.experimental.pallas import tpu as pltpu

N_EMBED = 64
HIDDEN = 4 * N_EMBED          # 256
_MAX_BLOCK_M = 2048           # ~5-6 MiB/step VMEM footprint -> safe everywhere
# dropout = 0.0 in the reference module -> identity; nothing to emit.


def ffn_kernel(x_ref, w1_ref, b1_ref, w2_ref, b2_ref, o_ref):
    # bf16 MXU operands, f32 accumulation; bias-add / ReLU in f32.
    x = x_ref[...].astype(jnp.bfloat16)                                # (bm, D)
    h = jnp.dot(x, w1_ref[...], preferred_element_type=jnp.float32)    # (bm, 4D)
    h = jnp.maximum(h + b1_ref[...], 0.0)                              # ReLU (f32)
    y = jnp.dot(h.astype(jnp.bfloat16), w2_ref[...],
                preferred_element_type=jnp.float32)                    # (bm, D)
    o_ref[...] = (y + b2_ref[...]).astype(o_ref.dtype)


def _round_up(x, m):
    return -(-x // m) * m


def _pick_block_m(m):
    """Large, overhead-amortized row tiles; >=2 big steps when M allows (v7x)."""
    if m <= 1024:
        # Single grid step. bm == M is always a legal second-to-last block dim
        # (equals the full array dim), so no sublane rounding / padding needed.
        return m
    bm = _round_up(pl.cdiv(m, 2), 128)   # >= 2 MXU-filling steps for v7x's 2 TCs
    return min(bm, _MAX_BLOCK_M)


def feed_forward(x, params, *, block_m=None):
    """x: (..., N_EMBED) float32. Returns same shape.

    Weights are stored (in, out): y = relu(x @ w1 + b1) @ w2 + b2,
    i.e. the transpose of PyTorch nn.Linear's (out, in) weight.
    """
    orig_shape = x.shape
    d = orig_shape[-1]
    assert d == N_EMBED, f"expected last dim {N_EMBED}, got {d}"

    x2 = x.reshape(-1, d)                  # fold all batch dims into M rows
    m = x2.shape[0]
    if block_m is None:
        block_m = _pick_block_m(m)
    grid = (pl.cdiv(m, block_m),)          # ragged last block masked by Pallas

    # Cast weights once (tiny, done outside the kernel); biases stay f32.
    w1 = params["w1"].astype(jnp.bfloat16)
    w2 = params["w2"].astype(jnp.bfloat16)
    b1 = params["b1"].astype(jnp.float32)
    b2 = params["b2"].astype(jnp.float32)

    flops = 4 * m * d * HIDDEN             # two matmuls: 2*M*D*H + 2*M*H*D
    bytes_accessed = (m * d * 4) * 2 \
        + (d * HIDDEN + HIDDEN * d) * 2 \
        + (HIDDEN + d) * 4

    out = pl.pallas_call(
        ffn_kernel,
        out_shape=jax.ShapeDtypeStruct((m, d), x.dtype),
        grid=grid,
        in_specs=[
            pl.BlockSpec((block_m, d), lambda i: (i, 0)),    # x row tile
            pl.BlockSpec((d, HIDDEN), lambda i: (0, 0)),     # w1 (resident)
            pl.BlockSpec((1, HIDDEN), lambda i: (0, 0)),     # b1
            pl.BlockSpec((HIDDEN, d), lambda i: (0, 0)),     # w2 (resident)
            pl.BlockSpec((1, d), lambda i: (0, 0)),          # b2
        ],
        out_specs=pl.BlockSpec((block_m, d), lambda i: (i, 0)),
        compiler_params=pltpu.CompilerParams(
            dimension_semantics=("parallel",)),
        cost_estimate=pl.CostEstimate(
            flops=flops, transcendentals=0, bytes_accessed=bytes_accessed),
    )(x2, w1, b1, w2, b2)

    return out.reshape(orig_shape)


def init_params(key):
    k1, k2, k3, k4 = jax.random.split(key, 4)
    lim1 = 1.0 / (N_EMBED ** 0.5)
    lim2 = 1.0 / (HIDDEN ** 0.5)
    return {
        "w1": jax.random.uniform(k1, (N_EMBED, HIDDEN), jnp.float32, -lim1, lim1),
        "b1": jax.random.uniform(k2, (1, HIDDEN), jnp.float32, -lim1, lim1),
        "w2": jax.random.uniform(k3, (HIDDEN, N_EMBED), jnp.float32, -lim2, lim2),
        "b2": jax.random.uniform(k4, (1, N_EMBED), jnp.float32, -lim2, lim2),
    }


def reference_forward(x, p):
    """Pure-JAX f32 reference mirroring the PyTorch FeedForward semantics."""
    h = jnp.maximum(x @ p["w1"] + p["b1"][0], 0.0)
    return h @ p["w2"] + p["b2"][0]


if __name__ == "__main__":
    key = jax.random.PRNGKey(0)
    pkey, xkey = jax.random.split(key)
    params = init_params(pkey)

    # (B, T, D) = (4, 64, 64) -> M = 256 rows, one MXU-filling grid step.
    B, T = 4, 64
    x = jax.random.normal(xkey, (B, T, N_EMBED), jnp.float32)

    y = jax.block_until_ready(feed_forward(x, params))
    assert y.shape == (B, T, N_EMBED)
    assert bool(jnp.all(jnp.isfinite(y)))

    ref = reference_forward(x, params)
    err = float(jnp.max(jnp.abs(y - ref)))
    # bf16 operands / f32 accumulation: tolerance loosened vs. pure-f32.
    assert err < 3e-2, err

    # Small / non-multiple-of-8 row count (single step, bm == M).
    x_small = jax.random.normal(xkey, (2, 5, N_EMBED), jnp.float32)
    y_small = jax.block_until_ready(feed_forward(x_small, params))
    err_small = float(jnp.max(jnp.abs(y_small - reference_forward(x_small, params))))
    assert err_small < 3e-2, err_small

    # Multi-step path with a masked partial last block:
    # M = 2100 -> block_m = 1152, grid = 2, last block ragged (948 rows).
    x_big = jax.random.normal(xkey, (3, 700, N_EMBED), jnp.float32)
    y_big = jax.block_until_ready(feed_forward(x_big, params))
    err_big = float(jnp.max(jnp.abs(y_big - reference_forward(x_big, params))))
    assert err_big < 3e-2, err_big

    print("KERNEL_OK")
</pallas_src>

<mosaic_0001>
module attributes {stable_mosaic.version = 11 : i64} {
  func.func @ffn_kernel(%arg0: i32, %arg1: memref<256x64xf32, #tpu.memory_space<vmem>>, %arg2: memref<64x256xbf16, #tpu.memory_space<vmem>>, %arg3: memref<1x256xf32, #tpu.memory_space<vmem>>, %arg4: memref<256x64xbf16, #tpu.memory_space<vmem>>, %arg5: memref<1x64xf32, #tpu.memory_space<vmem>>, %arg6: memref<256x64xf32, #tpu.memory_space<vmem>>) attributes {dimension_semantics = [#tpu.dimension_semantics<parallel>], iteration_bounds = array<i64: 1>, scalar_prefetch = 0 : i64, scratch_operands = 0 : i64, tpu.core_type = #tpu.core_type<tc>, window_params = [{transform_indices = @transform_0, window_bounds = array<i64: 256, 64>}, {pipeline_mode = #tpu.pipeline_mode<synchronous>, transform_indices = @transform_1, window_bounds = array<i64: 64, 256>}, {pipeline_mode = #tpu.pipeline_mode<synchronous>, transform_indices = @transform_2, window_bounds = array<i64: 1, 256>}, {pipeline_mode = #tpu.pipeline_mode<synchronous>, transform_indices = @transform_3, window_bounds = array<i64: 256, 64>}, {pipeline_mode = #tpu.pipeline_mode<synchronous>, transform_indices = @transform_4, window_bounds = array<i64: 1, 64>}, {transform_indices = @transform_5, window_bounds = array<i64: 256, 64>}]} {
    %c0 = arith.constant 0 : index
    %c0_0 = arith.constant 0 : index
    %0 = vector.load %arg1[%c0, %c0_0] : memref<256x64xf32, #tpu.memory_space<vmem>>, vector<256x64xf32>
    %1 = arith.truncf %0 : vector<256x64xf32> to vector<256x64xbf16>
    %c0_1 = arith.constant 0 : index
    %c0_2 = arith.constant 0 : index
    %2 = vector.load %arg2[%c0_1, %c0_2] : memref<64x256xbf16, #tpu.memory_space<vmem>>, vector<64x256xbf16>
    %cst = arith.constant dense<0.000000e+00> : vector<256x256xf32>
    %3 = tpu.matmul %1, %2, %cst {dimension_numbers = #tpu.dot_dimension_numbers<[1], [0], [0], [1], [0, 0, 1, 1], [], []>} : vector<256x64xbf16>, vector<64x256xbf16>, vector<256x256xf32> -> vector<256x256xf32>
    %c0_3 = arith.constant 0 : index
    %c0_4 = arith.constant 0 : index
    %4 = vector.load %arg3[%c0_3, %c0_4] : memref<1x256xf32, #tpu.memory_space<vmem>>, vector<1x256xf32>
    %5 = vector.broadcast %4 : vector<1x256xf32> to vector<256x256xf32>
    %6 = arith.addf %3, %5 : vector<256x256xf32>
    %cst_5 = arith.constant 0.000000e+00 : f32
    %7 = vector.broadcast %cst_5 : f32 to vector<256x256xf32>
    %8 = arith.maximumf %6, %7 : vector<256x256xf32>
    %9 = arith.truncf %8 : vector<256x256xf32> to vector<256x256xbf16>
    %c0_6 = arith.constant 0 : index
    %c0_7 = arith.constant 0 : index
    %10 = vector.load %arg4[%c0_6, %c0_7] : memref<256x64xbf16, #tpu.memory_space<vmem>>, vector<256x64xbf16>
    %cst_8 = arith.constant dense<0.000000e+00> : vector<256x64xf32>
    %11 = tpu.matmul %9, %10, %cst_8 {dimension_numbers = #tpu.dot_dimension_numbers<[1], [0], [0], [1], [0, 0, 1, 1], [], []>} : vector<256x256xbf16>, vector<256x64xbf16>, vector<256x64xf32> -> vector<256x64xf32>
    %c0_9 = arith.constant 0 : index
    %c0_10 = arith.constant 0 : index
    %12 = vector.load %arg5[%c0_9, %c0_10] : memref<1x64xf32, #tpu.memory_space<vmem>>, vector<1x64xf32>
    %13 = vector.broadcast %12 : vector<1x64xf32> to vector<256x64xf32>
    %14 = arith.addf %11, %13 : vector<256x64xf32>
    %c0_11 = arith.constant 0 : index
    %c0_12 = arith.constant 0 : index
    %15 = vector.load %arg6[%c0_11, %c0_12] : memref<256x64xf32, #tpu.memory_space<vmem>>, vector<256x64xf32>
    tpu.vector_store %arg6[%c0_11, %c0_12], %14 {strides = array<i32>} : memref<256x64xf32, #tpu.memory_space<vmem>>, vector<256x64xf32>,
    return
  }
  func.func @transform_0(%arg0: i32) -> (i32, i32) {
    %c0_i32 = arith.constant 0 : i32
    %c0_i32_0 = arith.constant 0 : i32
    return %arg0, %c0_i32 : i32, i32
  }
  func.func @transform_1(%arg0: i32) -> (i32, i32) {
    %c0_i32 = arith.constant 0 : i32
    %c0_i32_0 = arith.constant 0 : i32
    %c0_i32_1 = arith.constant 0 : i32
    return %c0_i32, %c0_i32_0 : i32, i32
  }
  func.func @transform_2(%arg0: i32) -> (i32, i32) {
    %c0_i32 = arith.constant 0 : i32
    %c0_i32_0 = arith.constant 0 : i32
    %c0_i32_1 = arith.constant 0 : i32
    return %c0_i32, %c0_i32_0 : i32, i32
  }
  func.func @transform_3(%arg0: i32) -> (i32, i32) {
    %c0_i32 = arith.constant 0 : i32
    %c0_i32_0 = arith.constant 0 : i32
    %c0_i32_1 = arith.constant 0 : i32
    return %c0_i32, %c0_i32_0 : i32, i32
  }
  func.func @transform_4(%arg0: i32) -> (i32, i32) {
    %c0_i32 = arith.constant 0 : i32
    %c0_i32_0 = arith.constant 0 : i32
    %c0_i32_1 = arith.constant 0 : i32
    return %c0_i32, %c0_i32_0 : i32, i32
  }
  func.func @transform_5(%arg0: i32) -> (i32, i32) {
    %c0_i32 = arith.constant 0 : i32
    %c0_i32_0 = arith.constant 0 : i32
    return %arg0, %c0_i32 : i32, i32
  }
}

</mosaic_0001>

<bundles_post_ra>
// kernel: tpu_custom_call.1
= control target key start
LH: loop header
LB: loop body
LE: loop exit
PB: predicated region body
PF: predicated region fallthrough
CT: control target
= control target key end

     0   :  { %v997_v1 = vmov 0   ;;  %vm129_vm0 = vcmask 523264   ;;  %s1464_s1 = inlined_call_operand.vmem [shape: bf16[64,256], index: 1, kind: input, shape index: {}]   ;;  %s1465_s0 = inlined_call_operand.vmem [shape: f32[256,64], index: 0, kind: input, shape index: {}]   ;;  %s1466_s3 = inlined_call_operand.vmem [shape: bf16[256,64], index: 3, kind: input, shape index: {}]   ;;  %s1467_s2 = inlined_call_operand.vmem [shape: f32[1,256], index: 2, kind: input, shape index: {}]   ;;  %s1468_s4 = inlined_call_operand.vmem [shape: f32[1,64], index: 4, kind: input, shape index: {}]   ;;  %s1469_s5 = inlined_call_operand.vmem [shape: f32[256,64], index: 5, kind: output, shape index: {}]  }
   0x1   :  { %v969_v0 = vld [vmem:[%s1464_s1 + $0x4] ss:$8 sps:$4 sm:$0xff]   ;;  %210 = vmatprep.mubr.bf16.mxu0 %v997_v1  ;;  %v971_v2 = vld [vmem:[%s1464_s1] ss:$8 sps:$4 sm:$0xff]   ;;  %v972_v3 = vld [vmem:[%s1464_s1 + $0x14] ss:$8 sps:$4 sm:$0xff]  }
   0x2   :  { %178 = vmatprep.subr.bf16.mxu0 %v969_v0  ;;  %v974_v4 = vld [vmem:[%s1464_s1 + $0x10] ss:$8 sps:$4 sm:$0xff]   ;;  %v975_v5 = vld [vmem:[%s1464_s1 + $0x24] ss:$8 sps:$4 sm:$0xff]   ;;  %v977_v6 = vld [vmem:[%s1464_s1 + $0x20] ss:$8 sps:$4 sm:$0xff]  }
   0x3   :  { %179 = vmatpush1.bf16.msra.mxu0 %v971_v2  ;;  %v978_v7 = vld [vmem:[%s1464_s1 + $0x34] ss:$8 sps:$4 sm:$0xff]   ;;  %v980_v8 = vld [vmem:[%s1464_s1 + $0x30] ss:$8 sps:$4 sm:$0xff]   ;;  %v21_v9 = vld [vmem:[%s1465_s0] sm:$0xff] }
   0x4   :  { %180 = vmatprep.subr.bf16.mxu0 %v972_v3  ;;  %v22_v10 = vld [vmem:[%s1465_s0 + $0x8] sm:$0xff]  ;;  %v981_v12 = vld [vmem:[%s1466_s3 + $0x40] sm:$0xff]   ;;  %v23_v13 = vld [vmem:[%s1465_s0 + $0x10] sm:$0xff] }
   0x5   :  { %v53_v11 = vpack.c.bf16 %v22_v10, %v21_v9  ;;  %v24_v14 = vld [vmem:[%s1465_s0 + $0x18] sm:$0xff]  ;;  %v982_v15 = vld [vmem:[%s1466_s3] sm:$0xff]   ;;  %v983_v16 = vld [vmem:[%s1466_s3 + $0x48] sm:$0xff]   ;;  %952 = vmatprep.subr.bf16.mxu1 %v981_v12  ;;  %v79_v10 = vlaneseq }
   0x6   :  { %v984_v17 = vld [vmem:[%s1466_s3 + $0x8] sm:$0xff]   ;;  %v985_v18 = vld [vmem:[%s1466_s3 + $0x50] sm:$0xff]   ;;  %960 = vmatpush3.bf16.msra.mxu1 %v982_v15  ;;  %v54_v19 = vpack.c.bf16 %v24_v14, %v23_v13  ;;  %v987_v21 = vld [vmem:[%s1466_s3 + $0x58] sm:$0xff]  }
   0x7   :  { %181 = vmatpush1.bf16.msra.mxu0 %v974_v4  ;;  %953 = vmatprep.subr.bf16.mxu1 %v983_v16  ;;  %v986_v20 = vld [vmem:[%s1466_s3 + $0x10] sm:$0xff]   ;;  %v25_v22 = vld [vmem:[%s1465_s0 + $0x20] sm:$0xff]  ;;  %v26_v23 = vld [vmem:[%s1465_s0 + $0x28] sm:$0xff] }
   0x8   :  { %182 = vmatprep.subr.bf16.mxu0 %v975_v5  ;;  %v988_v24 = vld [vmem:[%s1466_s3 + $0x18] sm:$0xff]   ;;  %v989_v25 = vld [vmem:[%s1466_s3 + $0x60] sm:$0xff]   ;;  %v55_v26 = vpack.c.bf16 %v26_v23, %v25_v22  ;;  %v991_v28 = vld [vmem:[%s1466_s3 + $0x68] sm:$0xff]  }
   0x9   :  { %v990_v27 = vld [vmem:[%s1466_s3 + $0x20] sm:$0xff]   ;;  %v27_v29 = vld [vmem:[%s1465_s0 + $0x30] sm:$0xff]  ;;  %v28_v30 = vld [vmem:[%s1465_s0 + $0x38] sm:$0xff] }
   0xa   :  { %961 = vmatpush3.bf16.msra.mxu1 %v984_v17  ;;  %v56_v31 = vpack.c.bf16 %v28_v30, %v27_v29  ;;  %v29_v32 = vld [vmem:[%s1465_s0 + $0x40] sm:$0xff]  ;;  %v30_v33 = vld [vmem:[%s1465_s0 + $0x48] sm:$0xff]  ;;  %v31_v35 = vld [vmem:[%s1465_s0 + $0x50] sm:$0xff] }
   0xb   :  { %183 = vmatpush1.bf16.msra.mxu0 %v977_v6  ;;  %954 = vmatprep.subr.bf16.mxu1 %v985_v18  ;;  %v57_v34 = vpack.c.bf16 %v30_v33, %v29_v32  ;;  %v32_v36 = vld [vmem:[%s1465_s0 + $0x58] sm:$0xff]  ;;  %v33_v38 = vld [vmem:[%s1465_s0 + $0x60] sm:$0xff]  ;;  %v34_v39 = vld [vmem:[%s1465_s0 + $0x68] sm:$0xff] }
   0xc   :  { %184 = vmatprep.subr.bf16.mxu0 %v978_v7  ;;  %v58_v37 = vpack.c.bf16 %v32_v36, %v31_v35  ;;  %v59_v40 = vpack.c.bf16 %v34_v39, %v33_v38  ;;  %v35_v41 = vld [vmem:[%s1465_s0 + $0x70] sm:$0xff]  ;;  %v36_v42 = vld [vmem:[%s1465_s0 + $0x78] sm:$0xff]  ;;  %v37_v44 = vld [vmem:[%s1465_s0 + $0x80] sm:$0xff] }
   0xd   :  { %v60_v43 = vpack.c.bf16 %v36_v42, %v35_v41  ;;  %v38_v45 = vld [vmem:[%s1465_s0 + $0x88] sm:$0xff]  ;;  %v39_v47 = vld [vmem:[%s1465_s0 + $0x90] sm:$0xff]  ;;  %v40_v48 = vld [vmem:[%s1465_s0 + $0x98] sm:$0xff] }
   0xe   :  { %962 = vmatpush3.bf16.msra.mxu1 %v986_v20  ;;  %v61_v46 = vpack.c.bf16 %v38_v45, %v37_v44  ;;  %v62_v49 = vpack.c.bf16 %v40_v48, %v39_v47  ;;  %v41_v50 = vld [vmem:[%s1465_s0 + $0xa0] sm:$0xff]  ;;  %v42_v51 = vld [vmem:[%s1465_s0 + $0xa8] sm:$0xff]  ;;  %v43_v53 = vld [vmem:[%s1465_s0 + $0xb0] sm:$0xff] }
   0xf   :  { %185 = vmatpush1.bf16.msra.mxu0 %v980_v8  ;;  %955 = vmatprep.subr.bf16.mxu1 %v987_v21  ;;  %v63_v52 = vpack.c.bf16 %v42_v51, %v41_v50  ;;  %v44_v54 = vld [vmem:[%s1465_s0 + $0xb8] sm:$0xff]  ;;  %v992_v55 = vld [vmem:[%s1466_s3 + $0x28] sm:$0xff]   ;;  %v993_v57 = vld [vmem:[%s1466_s3 + $0x70] sm:$0xff]  }
  0x10   :  { %840 = vmatprep.subr.bf16.mxu0 %v981_v12  ;;  %v64_v56 = vpack.c.bf16 %v44_v54, %v43_v53  ;;  %v994_v58 = vld [vmem:[%s1466_s3 + $0x30] sm:$0xff]   ;;  %v995_v59 = vld [vmem:[%s1466_s3 + $0x78] sm:$0xff]   ;;  %v45_v60 = vld [vmem:[%s1465_s0 + $0xc0] sm:$0xff] }
  0x11   :  { %v46_v61 = vld [vmem:[%s1465_s0 + $0xc8] sm:$0xff]  ;;  %v996_v62 = vld [vmem:[%s1466_s3 + $0x38] sm:$0xff]   ;;  %v47_v0 = vld [vmem:[%s1465_s0 + $0xd0] sm:$0xff] }
  0x12   :  { %807 = vmatmul.mubr.msk.bf16.vlgmr.msra.gmra.mrb[0].mxu0 %vm129_vm0, %v53_v11  ;;  %963 = vmatpush3.bf16.msra.mxu1 %v988_v24  ;;  %v65_v63 = vpack.c.bf16 %v46_v61, %v45_v60  ;;  %v48_v2 = vld [vmem:[%s1465_s0 + $0xd8] sm:$0xff]  ;;  %v49_v4 = vld [vmem:[%s1465_s0 + $0xe0] sm:$0xff]  ;;  %v50_v5 = vld [vmem:[%s1465_s0 + $0xe8] sm:$0xff]  ;;  %v80_v11 = vshrl.u32 %v79_v10, 7 }
  0x13   :  { %220 = vmatprep.mubr.bf16.mxu0 %v997_v1  ;;  %841 = vmatpush3.bf16.msra.mxu0 %v982_v15  ;;  %v66_v3 = vpack.c.bf16 %v48_v2, %v47_v0  ;;  %v67_v6 = vpack.c.bf16 %v50_v5, %v49_v4  ;;  %v51_v7 = vld [vmem:[%s1465_s0 + $0xf0] sm:$0xff]  ;;  %v52_v8 = vld [vmem:[%s1465_s0 + $0xf8] sm:$0xff]  ;;  %v77_v13 = vld [vmem:[%s1467_s2] sm:$0x3] }
  0x14   :  { %842 = vmatprep.subr.bf16.mxu0 %v983_v16  ;;  %956 = vmatprep.subr.bf16.mxu1 %v989_v25  ;;  %v68_v9 = vpack.c.bf16 %v52_v8, %v51_v7  ;;  %v81_v12 = vsub.s32 0, %v80_v11  ;;  %v85_v14 = vsub.s32 1, %v80_v11 }
  0x16   :  { %964 = vmatpush3.bf16.msra.mxu1 %v990_v27  ;;  %v1233_v15 = vrot.slane %v77_v13, %v85_v14 }
  0x17   :  { %843 = vmatpush3.bf16.msra.mxu0 %v984_v17  ;;  %957 = vmatprep.subr.bf16.mxu1 %v991_v28 }
  0x18   :  { %844 = vmatprep.subr.bf16.mxu0 %v985_v18 }
  0x1a   :  { %808 = vmatmul.mubr.msk.bf16.gmra.mrb[4].mxu0 %vm129_vm0, %v54_v19  ;;  %965 = vmatpush3.bf16.msra.mxu1 %v992_v55 }
  0x1b   :  { %230 = vmatprep.mubr.bf16.mxu0 %v997_v1  ;;  %845 = vmatpush3.bf16.msra.mxu0 %v986_v20 }
  0x1c   :  { %846 = vmatprep.subr.bf16.mxu0 %v987_v21  ;;  %958 = vmatprep.subr.bf16.mxu1 %v993_v57 }
  0x1e   :  { %966 = vmatpush3.bf16.msra.mxu1 %v994_v58 }
  0x1f   :  { %847 = vmatpush3.bf16.msra.mxu0 %v988_v24  ;;  %959 = vmatprep.subr.bf16.mxu1 %v995_v59 }
  0x20   :  { %848 = vmatprep.subr.bf16.mxu0 %v989_v25 }
  0x22   :  { %809 = vmatmul.mubr.msk.bf16.gmra.mrb[8].mxu0 %vm129_vm0, %v55_v26  ;;  %967 = vmatpush3.bf16.msra.mxu1 %v996_v62 }
  0x23   :  { %240 = vmatprep.mubr.bf16.mxu0 %v997_v1  ;;  %849 = vmatpush3.bf16.msra.mxu0 %v990_v27 }
  0x24   :  { %850 = vmatprep.subr.bf16.mxu0 %v991_v28 }
  0x27   :  { %851 = vmatpush3.bf16.msra.mxu0 %v992_v55 }
  0x28   :  { %852 = vmatprep.subr.bf16.mxu0 %v993_v57 }
  0x2a   :  { %810 = vmatmul.mubr.msk.bf16.gmra.mrb[12].mxu0 %vm129_vm0, %v56_v31 }
  0x2b   :  { %250 = vmatprep.mubr.bf16.mxu0 %v997_v1  ;;  %853 = vmatpush3.bf16.msra.mxu0 %v994_v58 }
  0x2c   :  { %854 = vmatprep.subr.bf16.mxu0 %v995_v59 }
  0x2f   :  { %855 = vmatpush3.bf16.msra.mxu0 %v996_v62 }
  0x32   :  { %811 = vmatmul.mubr.msk.bf16.gmra.mrb[16].mxu0 %vm129_vm0, %v57_v34 }
  0x33   :  { %260 = vmatprep.mubr.bf16.mxu0 %v997_v1 }
  0x3a   :  { %812 = vmatmul.mubr.msk.bf16.gmra.mrb[20].mxu0 %vm129_vm0, %v58_v37 }
  0x3b   :  { %270 = vmatprep.mubr.bf16.mxu0 %v997_v1 }
  0x42   :  { %813 = vmatmul.mubr.msk.bf16.gmra.mrb[24].mxu0 %vm129_vm0, %v59_v40 }
  0x43   :  { %280 = vmatprep.mubr.bf16.mxu0 %v997_v1 }
  0x4a   :  { %814 = vmatmul.mubr.msk.bf16.gmra.mrb[28].mxu0 %vm129_vm0, %v60_v43 }
  0x4b   :  { %290 = vmatprep.mubr.bf16.mxu0 %v997_v1 }
  0x52   :  { %815 = vmatmul.mubr.msk.bf16.gmra.mrb[32].mxu0 %vm129_vm0, %v61_v46 }
  0x53   :  { %300 = vmatprep.mubr.bf16.mxu0 %v997_v1 }
  0x5a   :  { %816 = vmatmul.mubr.msk.bf16.gmra.mrb[36].mxu0 %vm129_vm0, %v62_v49 }
  0x5b   :  { %310 = vmatprep.mubr.bf16.mxu0 %v997_v1 }
  0x62   :  { %817 = vmatmul.mubr.msk.bf16.gmra.mrb[40].mxu0 %vm129_vm0, %v63_v52 }
  0x63   :  { %320 = vmatprep.mubr.bf16.mxu0 %v997_v1 }
  0x6a   :  { %818 = vmatmul.mubr.msk.bf16.gmra.mrb[44].mxu0 %vm129_vm0, %v64_v56 }
  0x6b   :  { %330 = vmatprep.mubr.bf16.mxu0 %v997_v1 }
  0x72   :  { %819 = vmatmul.mubr.msk.bf16.gmra.mrb[48].mxu0 %vm129_vm0, %v65_v63 }
  0x73   :  { %340 = vmatprep.mubr.bf16.mxu0 %v997_v1 }
  0x7a   :  { %820 = vmatmul.mubr.msk.bf16.gmra.mrb[52].mxu0 %vm129_vm0, %v66_v3 }
  0x7b   :  { %350 = vmatprep.mubr.bf16.mxu0 %v997_v1 }
  0x82   :  { %821 = vmatmul.mubr.msk.bf16.gmra.mrb[56].mxu0 %vm129_vm0, %v67_v6 }
  0x83   :  { %360 = vmatprep.mubr.bf16.mxu0 %v997_v1  ;;  %v1231_v1 = vrot.slane %v77_v13, %v81_v12 }
  0x8a   :  { %822 = vmatmul.mubr.msk.bf16.gmra.mrb[60].mxu0 %vm129_vm0, %v68_v9 }
  0xe5   :  { %v212_v16 = vpop.f32.mrb[0].mxu0 }
  0xe6   :  { %v213_v17 = vadd.f32 %v212_v16, %v1231_v1  ;;  %v214_v18 = vpop.f32.mrb[1].mxu0 }
  0xe7   :  { %v215_v19 = vadd.f32 %v214_v18, %v1233_v15  ;;  %v216_v20 = vpop.f32.mrb[2].mxu0 }
  0xe8   :  { %v217_v21 = vadd.f32 %v216_v20, %v1231_v1  ;;  %v218_v22 = vpop.f32.mrb[3].mxu0  ;;  %v371_v24 = vmax.f32 %v213_v17, 0.0 }
  0xe9   :  { %v219_v23 = vadd.f32 %v218_v22, %v1233_v15  ;;  %v372_v26 = vmax.f32 %v215_v19, 0.0 }
  0xea   :  { %v373_v25 = vmax.f32 %v217_v21, 0.0 }
  0xeb   :  { %v374_v27 = vmax.f32 %v219_v23, 0.0 }
  0xec   :  { %v435_v28 = vpack.c.bf16 %v373_v25, %v371_v24 }
  0xed   :  { %v436_v29 = vpack.c.bf16 %v374_v27, %v372_v26  ;;  %v222_v30 = vpop.f32.mrb[4].mxu0 }
  0xee   :  { %v223_v31 = vadd.f32 %v222_v30, %v1231_v1  ;;  %v224_v32 = vpop.f32.mrb[5].mxu0 }
  0xef   :  { %v225_v33 = vadd.f32 %v224_v32, %v1233_v15  ;;  %v226_v34 = vpop.f32.mrb[6].mxu0  ;;  %634 = vmatprep.mubr.bf16.mxu0 %v436_v29 }
  0xf0   :  { %v227_v35 = vadd.f32 %v226_v34, %v1231_v1  ;;  %v228_v36 = vpop.f32.mrb[7].mxu0  ;;  %635 = vmatmul.mubr.bf16.vlgmr.msra.gmra.mrb[64].mxu0 %v435_v28  ;;  %v375_v38 = vmax.f32 %v223_v31, 0.0 }
  0xf1   :  { %v229_v37 = vadd.f32 %v228_v36, %v1233_v15  ;;  %v376_v40 = vmax.f32 %v225_v33, 0.0 }
  0xf2   :  { %v377_v39 = vmax.f32 %v227_v35, 0.0 }
  0xf3   :  { %v378_v41 = vmax.f32 %v229_v37, 0.0 }
  0xf4   :  { %v437_v42 = vpack.c.bf16 %v377_v39, %v375_v38 }
  0xf5   :  { %v232_v43 = vpop.f32.mrb[8].mxu0  ;;  %v438_v44 = vpack.c.bf16 %v378_v41, %v376_v40 }
  0xf6   :  { %v233_v45 = vadd.f32 %v232_v43, %v1231_v1  ;;  %v234_v46 = vpop.f32.mrb[9].mxu0 }
  0xf7   :  { %v235_v47 = vadd.f32 %v234_v46, %v1233_v15  ;;  %v236_v48 = vpop.f32.mrb[10].mxu0  ;;  %642 = vmatprep.mubr.bf16.mxu1 %v438_v44 }
  0xf8   :  { %v237_v49 = vadd.f32 %v236_v48, %v1231_v1  ;;  %v238_v50 = vpop.f32.mrb[11].mxu0  ;;  %643 = vmatmul.mubr.bf16.vlgmr.msra.gmra.mrb[0].mxu1 %v437_v42  ;;  %v379_v52 = vmax.f32 %v233_v45, 0.0 }
  0xf9   :  { %v239_v51 = vadd.f32 %v238_v50, %v1233_v15  ;;  %v380_v54 = vmax.f32 %v235_v47, 0.0 }
  0xfa   :  { %v381_v53 = vmax.f32 %v237_v49, 0.0 }
  0xfb   :  { %v382_v55 = vmax.f32 %v239_v51, 0.0 }
  0xfc   :  { %v439_v56 = vpack.c.bf16 %v381_v53, %v379_v52 }
  0xfd   :  { %v440_v57 = vpack.c.bf16 %v382_v55, %v380_v54  ;;  %v242_v58 = vpop.f32.mrb[12].mxu0 }
  0xfe   :  { %v243_v59 = vadd.f32 %v242_v58, %v1231_v1  ;;  %v244_v60 = vpop.f32.mrb[13].mxu0 }
  0xff   :  { %v245_v61 = vadd.f32 %v244_v60, %v1233_v15  ;;  %v246_v62 = vpop.f32.mrb[14].mxu0  ;;  %650 = vmatprep.mubr.bf16.mxu1 %v440_v57 }
 0x100   :  { %v247_v63 = vadd.f32 %v246_v62, %v1231_v1  ;;  %v248_v0 = vpop.f32.mrb[15].mxu0  ;;  %651 = vmatmul.mubr.bf16.gmra.mrb[4].mxu1 %v439_v56  ;;  %v383_v3 = vmax.f32 %v243_v59, 0.0 }
 0x101   :  { %v249_v2 = vadd.f32 %v248_v0, %v1233_v15  ;;  %v384_v5 = vmax.f32 %v245_v61, 0.0 }
 0x102   :  { %v385_v4 = vmax.f32 %v247_v63, 0.0 }
 0x103   :  { %v386_v6 = vmax.f32 %v249_v2, 0.0 }
 0x104   :  { %v441_v7 = vpack.c.bf16 %v385_v4, %v383_v3 }
 0x105   :  { %v442_v8 = vpack.c.bf16 %v386_v6, %v384_v5  ;;  %v252_v9 = vpop.f32.mrb[16].mxu0 }
 0x106   :  { %v253_v10 = vadd.f32 %v252_v9, %v1231_v1  ;;  %v254_v11 = vpop.f32.mrb[17].mxu0 }
 0x107   :  { %v255_v12 = vadd.f32 %v254_v11, %v1233_v15  ;;  %v256_v13 = vpop.f32.mrb[18].mxu0  ;;  %658 = vmatprep.mubr.bf16.mxu1 %v442_v8 }
 0x108   :  { %v257_v14 = vadd.f32 %v256_v13, %v1231_v1  ;;  %v258_v16 = vpop.f32.mrb[19].mxu0  ;;  %659 = vmatmul.mubr.bf16.gmra.mrb[8].mxu1 %v441_v7  ;;  %v387_v18 = vmax.f32 %v253_v10, 0.0 }
 0x109   :  { %v259_v17 = vadd.f32 %v258_v16, %v1233_v15  ;;  %v388_v20 = vmax.f32 %v255_v12, 0.0 }
 0x10a   :  { %v389_v19 = vmax.f32 %v257_v14, 0.0 }
 0x10b   :  { %v390_v21 = vmax.f32 %v259_v17, 0.0 }
 0x10c   :  { %v443_v22 = vpack.c.bf16 %v389_v19, %v387_v18 }
 0x10d   :  { %v444_v23 = vpack.c.bf16 %v390_v21, %v388_v20  ;;  %v262_v24 = vpop.f32.mrb[20].mxu0 }
 0x10e   :  { %v263_v25 = vadd.f32 %v262_v24, %v1231_v1  ;;  %v264_v26 = vpop.f32.mrb[21].mxu0 }
 0x10f   :  { %v265_v27 = vadd.f32 %v264_v26, %v1233_v15  ;;  %v266_v28 = vpop.f32.mrb[22].mxu0  ;;  %666 = vmatprep.mubr.bf16.mxu1 %v444_v23 }
 0x110   :  { %v267_v29 = vadd.f32 %v266_v28, %v1231_v1  ;;  %v268_v30 = vpop.f32.mrb[23].mxu0  ;;  %667 = vmatmul.mubr.bf16.gmra.mrb[12].mxu1 %v443_v22  ;;  %v391_v32 = vmax.f32 %v263_v25, 0.0 }
 0x111   :  { %v269_v31 = vadd.f32 %v268_v30, %v1233_v15  ;;  %v392_v34 = vmax.f32 %v265_v27, 0.0 }
 0x112   :  { %v393_v33 = vmax.f32 %v267_v29, 0.0 }
 0x113   :  { %v394_v35 = vmax.f32 %v269_v31, 0.0 }
 0x114   :  { %v445_v36 = vpack.c.bf16 %v393_v33, %v391_v32 }
 0x115   :  { %v446_v37 = vpack.c.bf16 %v394_v35, %v392_v34  ;;  %v272_v38 = vpop.f32.mrb[24].mxu0 }
 0x116   :  { %v273_v39 = vadd.f32 %v272_v38, %v1231_v1  ;;  %v274_v40 = vpop.f32.mrb[25].mxu0 }
 0x117   :  { %v275_v41 = vadd.f32 %v274_v40, %v1233_v15  ;;  %v276_v42 = vpop.f32.mrb[26].mxu0  ;;  %674 = vmatprep.mubr.bf16.mxu1 %v446_v37 }
 0x118   :  { %v277_v43 = vadd.f32 %v276_v42, %v1231_v1  ;;  %v278_v44 = vpop.f32.mrb[27].mxu0  ;;  %675 = vmatmul.mubr.bf16.gmra.mrb[16].mxu1 %v445_v36  ;;  %v395_v46 = vmax.f32 %v273_v39, 0.0 }
 0x119   :  { %v279_v45 = vadd.f32 %v278_v44, %v1233_v15  ;;  %v396_v48 = vmax.f32 %v275_v41, 0.0 }
 0x11a   :  { %v397_v47 = vmax.f32 %v277_v43, 0.0 }
 0x11b   :  { %v398_v49 = vmax.f32 %v279_v45, 0.0 }
 0x11c   :  { %v447_v50 = vpack.c.bf16 %v397_v47, %v395_v46 }
 0x11d   :  { %v448_v51 = vpack.c.bf16 %v398_v49, %v396_v48  ;;  %v282_v52 = vpop.f32.mrb[28].mxu0 }
 0x11e   :  { %v283_v53 = vadd.f32 %v282_v52, %v1231_v1  ;;  %v284_v54 = vpop.f32.mrb[29].mxu0 }
 0x11f   :  { %v285_v55 = vadd.f32 %v284_v54, %v1233_v15  ;;  %v286_v56 = vpop.f32.mrb[30].mxu0  ;;  %682 = vmatprep.mubr.bf16.mxu1 %v448_v51 }
 0x120   :  { %v287_v57 = vadd.f32 %v286_v56, %v1231_v1  ;;  %v288_v58 = vpop.f32.mrb[31].mxu0  ;;  %683 = vmatmul.mubr.bf16.gmra.mrb[20].mxu1 %v447_v50  ;;  %v399_v60 = vmax.f32 %v283_v53, 0.0 }
 0x121   :  { %v289_v59 = vadd.f32 %v288_v58, %v1233_v15  ;;  %v400_v62 = vmax.f32 %v285_v55, 0.0 }
 0x122   :  { %v401_v61 = vmax.f32 %v287_v57, 0.0 }
 0x123   :  { %v402_v63 = vmax.f32 %v289_v59, 0.0 }
 0x124   :  { %v449_v0 = vpack.c.bf16 %v401_v61, %v399_v60 }
 0x125   :  { %v450_v2 = vpack.c.bf16 %v402_v63, %v400_v62  ;;  %v292_v3 = vpop.f32.mrb[32].mxu0 }
 0x126   :  { %v293_v4 = vadd.f32 %v292_v3, %v1231_v1  ;;  %v294_v5 = vpop.f32.mrb[33].mxu0 }
 0x127   :  { %v295_v6 = vadd.f32 %v294_v5, %v1233_v15  ;;  %v296_v7 = vpop.f32.mrb[34].mxu0  ;;  %690 = vmatprep.mubr.bf16.mxu1 %v450_v2 }
 0x128   :  { %v297_v8 = vadd.f32 %v296_v7, %v1231_v1  ;;  %v298_v9 = vpop.f32.mrb[35].mxu0  ;;  %691 = vmatmul.mubr.bf16.gmra.mrb[24].mxu1 %v449_v0  ;;  %v403_v11 = vmax.f32 %v293_v4, 0.0 }
 0x129   :  { %v299_v10 = vadd.f32 %v298_v9, %v1233_v15  ;;  %v404_v13 = vmax.f32 %v295_v6, 0.0 }
 0x12a   :  { %v405_v12 = vmax.f32 %v297_v8, 0.0 }
 0x12b   :  { %v406_v14 = vmax.f32 %v299_v10, 0.0 }
 0x12c   :  { %v451_v16 = vpack.c.bf16 %v405_v12, %v403_v11 }
 0x12d   :  { %v452_v17 = vpack.c.bf16 %v406_v14, %v404_v13  ;;  %v302_v18 = vpop.f32.mrb[36].mxu0 }
 0x12e   :  { %v303_v19 = vadd.f32 %v302_v18, %v1231_v1  ;;  %v304_v20 = vpop.f32.mrb[37].mxu0 }
 0x12f   :  { %v305_v21 = vadd.f32 %v304_v20, %v1233_v15  ;;  %v306_v22 = vpop.f32.mrb[38].mxu0  ;;  %698 = vmatprep.mubr.bf16.mxu1 %v452_v17 }
 0x130   :  { %v307_v23 = vadd.f32 %v306_v22, %v1231_v1  ;;  %v308_v24 = vpop.f32.mrb[39].mxu0  ;;  %699 = vmatmul.mubr.bf16.gmra.mrb[28].mxu1 %v451_v16  ;;  %v407_v26 = vmax.f32 %v303_v19, 0.0 }
 0x131   :  { %v309_v25 = vadd.f32 %v308_v24, %v1233_v15  ;;  %v408_v28 = vmax.f32 %v305_v21, 0.0 }
 0x132   :  { %v409_v27 = vmax.f32 %v307_v23, 0.0 }
 0x133   :  { %v410_v29 = vmax.f32 %v309_v25, 0.0 }
 0x134   :  { %v453_v30 = vpack.c.bf16 %v409_v27, %v407_v26 }
 0x135   :  { %v454_v31 = vpack.c.bf16 %v410_v29, %v408_v28  ;;  %v312_v32 = vpop.f32.mrb[40].mxu0 }
 0x136   :  { %v313_v33 = vadd.f32 %v312_v32, %v1231_v1  ;;  %v314_v34 = vpop.f32.mrb[41].mxu0 }
 0x137   :  { %v315_v35 = vadd.f32 %v314_v34, %v1233_v15  ;;  %v316_v36 = vpop.f32.mrb[42].mxu0  ;;  %706 = vmatprep.mubr.bf16.mxu1 %v454_v31 }
 0x138   :  { %v317_v37 = vadd.f32 %v316_v36, %v1231_v1  ;;  %v318_v38 = vpop.f32.mrb[43].mxu0  ;;  %707 = vmatmul.mubr.bf16.gmra.mrb[32].mxu1 %v453_v30  ;;  %v411_v40 = vmax.f32 %v313_v33, 0.0 }
 0x139   :  { %v319_v39 = vadd.f32 %v318_v38, %v1233_v15  ;;  %v412_v42 = vmax.f32 %v315_v35, 0.0 }
 0x13a   :  { %v413_v41 = vmax.f32 %v317_v37, 0.0 }
 0x13b   :  { %v414_v43 = vmax.f32 %v319_v39, 0.0 }
 0x13c   :  { %v455_v44 = vpack.c.bf16 %v413_v41, %v411_v40 }
 0x13d   :  { %v456_v45 = vpack.c.bf16 %v414_v43, %v412_v42  ;;  %v322_v46 = vpop.f32.mrb[44].mxu0 }
 0x13e   :  { %v323_v47 = vadd.f32 %v322_v46, %v1231_v1  ;;  %v324_v48 = vpop.f32.mrb[45].mxu0 }
 0x13f   :  { %v325_v49 = vadd.f32 %v324_v48, %v1233_v15  ;;  %v326_v50 = vpop.f32.mrb[46].mxu0  ;;  %714 = vmatprep.mubr.bf16.mxu1 %v456_v45 }
 0x140   :  { %v327_v51 = vadd.f32 %v326_v50, %v1231_v1  ;;  %v328_v52 = vpop.f32.mrb[47].mxu0  ;;  %715 = vmatmul.mubr.bf16.gmra.mrb[36].mxu1 %v455_v44  ;;  %v415_v54 = vmax.f32 %v323_v47, 0.0 }
 0x141   :  { %v329_v53 = vadd.f32 %v328_v52, %v1233_v15  ;;  %v416_v56 = vmax.f32 %v325_v49, 0.0 }
 0x142   :  { %v417_v55 = vmax.f32 %v327_v51, 0.0 }
 0x143   :  { %v418_v57 = vmax.f32 %v329_v53, 0.0 }
 0x144   :  { %v457_v58 = vpack.c.bf16 %v417_v55, %v415_v54  ;;  %v1302_v55 = vld [vmem:[%s1468_s4] ss:$0 sm:$0xff] }
 0x145   :  { %v458_v59 = vpack.c.bf16 %v418_v57, %v416_v56  ;;  %v332_v60 = vpop.f32.mrb[48].mxu0 }
 0x146   :  { %v333_v61 = vadd.f32 %v332_v60, %v1231_v1  ;;  %v334_v62 = vpop.f32.mrb[49].mxu0 }
 0x147   :  { %v335_v63 = vadd.f32 %v334_v62, %v1233_v15  ;;  %v336_v0 = vpop.f32.mrb[50].mxu0  ;;  %722 = vmatprep.mubr.bf16.mxu1 %v458_v59 }
 0x148   :  { %v337_v2 = vadd.f32 %v336_v0, %v1231_v1  ;;  %v338_v3 = vpop.f32.mrb[51].mxu0  ;;  %723 = vmatmul.mubr.bf16.gmra.mrb[40].mxu1 %v457_v58  ;;  %v419_v5 = vmax.f32 %v333_v61, 0.0 }
 0x149   :  { %v339_v4 = vadd.f32 %v338_v3, %v1233_v15  ;;  %v420_v7 = vmax.f32 %v335_v63, 0.0 }
 0x14a   :  { %v421_v6 = vmax.f32 %v337_v2, 0.0 }
 0x14b   :  { %v422_v8 = vmax.f32 %v339_v4, 0.0 }
 0x14c   :  { %v459_v9 = vpack.c.bf16 %v421_v6, %v419_v5 }
 0x14d   :  { %v460_v10 = vpack.c.bf16 %v422_v8, %v420_v7  ;;  %v342_v11 = vpop.f32.mrb[52].mxu0 }
 0x14e   :  { %v343_v12 = vadd.f32 %v342_v11, %v1231_v1  ;;  %v344_v13 = vpop.f32.mrb[53].mxu0 }
 0x14f   :  { %v345_v14 = vadd.f32 %v344_v13, %v1233_v15  ;;  %v346_v16 = vpop.f32.mrb[54].mxu0  ;;  %730 = vmatprep.mubr.bf16.mxu1 %v460_v10 }
 0x150   :  { %v347_v17 = vadd.f32 %v346_v16, %v1231_v1  ;;  %v348_v18 = vpop.f32.mrb[55].mxu0  ;;  %731 = vmatmul.mubr.bf16.gmra.mrb[44].mxu1 %v459_v9  ;;  %v423_v20 = vmax.f32 %v343_v12, 0.0 }
 0x151   :  { %v349_v19 = vadd.f32 %v348_v18, %v1233_v15  ;;  %v424_v22 = vmax.f32 %v345_v14, 0.0 }
 0x152   :  { %v425_v21 = vmax.f32 %v347_v17, 0.0 }
 0x153   :  { %v426_v23 = vmax.f32 %v349_v19, 0.0 }
 0x154   :  { %v461_v24 = vpack.c.bf16 %v425_v21, %v423_v20 }
 0x155   :  { %v462_v25 = vpack.c.bf16 %v426_v23, %v424_v22  ;;  %v352_v26 = vpop.f32.mrb[56].mxu0 }
 0x156   :  { %v353_v27 = vadd.f32 %v352_v26, %v1231_v1  ;;  %v354_v28 = vpop.f32.mrb[57].mxu0 }
 0x157   :  { %v355_v29 = vadd.f32 %v354_v28, %v1233_v15  ;;  %v356_v30 = vpop.f32.mrb[58].mxu0  ;;  %738 = vmatprep.mubr.bf16.mxu1 %v462_v25 }
 0x158   :  { %v357_v31 = vadd.f32 %v356_v30, %v1231_v1  ;;  %v358_v32 = vpop.f32.mrb[59].mxu0  ;;  %739 = vmatmul.mubr.bf16.gmra.mrb[48].mxu1 %v461_v24  ;;  %v427_v34 = vmax.f32 %v353_v27, 0.0 }
 0x159   :  { %v359_v33 = vadd.f32 %v358_v32, %v1233_v15  ;;  %v428_v36 = vmax.f32 %v355_v29, 0.0 }
 0x15a   :  { %v429_v35 = vmax.f32 %v357_v31, 0.0 }
 0x15b   :  { %v430_v37 = vmax.f32 %v359_v33, 0.0 }
 0x15c   :  { %v463_v38 = vpack.c.bf16 %v429_v35, %v427_v34 }
 0x15d   :  { %v464_v39 = vpack.c.bf16 %v430_v37, %v428_v36  ;;  %v362_v40 = vpop.f32.mrb[60].mxu0 }
 0x15e   :  { %v363_v41 = vadd.f32 %v362_v40, %v1231_v1  ;;  %v364_v42 = vpop.f32.mrb[61].mxu0 }
 0x15f   :  { %v365_v43 = vadd.f32 %v364_v42, %v1233_v15  ;;  %v366_v44 = vpop.f32.mrb[62].mxu0  ;;  %746 = vmatprep.mubr.bf16.mxu1 %v464_v39 }
 0x160   :  { %v367_v45 = vadd.f32 %v366_v44, %v1231_v1  ;;  %v368_v46 = vpop.f32.mrb[63].mxu0  ;;  %747 = vmatmul.mubr.bf16.gmra.mrb[52].mxu1 %v463_v38  ;;  %v431_v48 = vmax.f32 %v363_v41, 0.0 }
 0x161   :  { %v369_v47 = vadd.f32 %v368_v46, %v1233_v15  ;;  %v432_v50 = vmax.f32 %v365_v43, 0.0 }
 0x162   :  { %v433_v49 = vmax.f32 %v367_v45, 0.0 }
 0x163   :  { %v434_v51 = vmax.f32 %v369_v47, 0.0 }
 0x164   :  { %v465_v52 = vpack.c.bf16 %v433_v49, %v431_v48 }
 0x165   :  { %v466_v53 = vpack.c.bf16 %v434_v51, %v432_v50 }
 0x167   :  { %754 = vmatprep.mubr.bf16.mxu1 %v466_v53 }
 0x168   :  { %755 = vmatmul.mubr.bf16.gmra.mrb[56].mxu1 %v465_v52 }
 0x1c3   :  { %v856_v54 = vpop.f32.mrb[64].mxu0 }
 0x1c4   :  { %v857_v56 = vpop.f32.mrb[65].mxu0 }
 0x1c5   :  { %v858_v1 = vadd.f32 %v857_v56, %v856_v54  ;;  %v859_v57 = vpop.f32.mrb[66].mxu0 }
 0x1c6   :  { %v860_v58 = vpop.f32.mrb[67].mxu0 }
 0x1c7   :  { %v637_v15 = vadd.f32 %v858_v1, %v1302_v55  ;;  %v861_v59 = vadd.f32 %v860_v58, %v859_v57 }
 0x1c9   :  { %763 = vst.msk [vmem:[%s1469_s5] sm:$0xff] %vm129_vm0, %v637_v15  ;;  %v640_v60 = vadd.f32 %v861_v59, %v1302_v55 }
 0x1cb   :  { %764 = vst.msk [vmem:[%s1469_s5 + $0x8] sm:$0xff] %vm129_vm0, %v640_v60  ;;  %v862_v61 = vpop.f32.mrb[0].mxu1 }
 0x1cc   :  { %v863_v62 = vpop.f32.mrb[1].mxu1 }
 0x1cd   :  { %v864_v63 = vadd.f32 %v863_v62, %v862_v61  ;;  %v865_v0 = vpop.f32.mrb[2].mxu1 }
 0x1ce   :  { %v866_v2 = vpop.f32.mrb[3].mxu1 }
 0x1cf   :  { %v645_v3 = vadd.f32 %v864_v63, %v1302_v55  ;;  %v867_v4 = vadd.f32 %v866_v2, %v865_v0 }
 0x1d1   :  { %765 = vst.msk [vmem:[%s1469_s5 + $0x10] sm:$0xff] %vm129_vm0, %v645_v3  ;;  %v648_v5 = vadd.f32 %v867_v4, %v1302_v55 }
 0x1d3   :  { %766 = vst.msk [vmem:[%s1469_s5 + $0x18] sm:$0xff] %vm129_vm0, %v648_v5  ;;  %v868_v6 = vpop.f32.mrb[4].mxu1 }
 0x1d4   :  { %v869_v7 = vpop.f32.mrb[5].mxu1 }
 0x1d5   :  { %v870_v8 = vadd.f32 %v869_v7, %v868_v6  ;;  %v871_v9 = vpop.f32.mrb[6].mxu1 }
 0x1d6   :  { %v872_v10 = vpop.f32.mrb[7].mxu1 }
 0x1d7   :  { %v653_v11 = vadd.f32 %v870_v8, %v1302_v55  ;;  %v873_v12 = vadd.f32 %v872_v10, %v871_v9 }
 0x1d9   :  { %767 = vst.msk [vmem:[%s1469_s5 + $0x20] sm:$0xff] %vm129_vm0, %v653_v11  ;;  %v656_v13 = vadd.f32 %v873_v12, %v1302_v55 }
 0x1db   :  { %768 = vst.msk [vmem:[%s1469_s5 + $0x28] sm:$0xff] %vm129_vm0, %v656_v13  ;;  %v874_v14 = vpop.f32.mrb[8].mxu1 }
 0x1dc   :  { %v875_v16 = vpop.f32.mrb[9].mxu1 }
 0x1dd   :  { %v876_v17 = vadd.f32 %v875_v16, %v874_v14  ;;  %v877_v18 = vpop.f32.mrb[10].mxu1 }
 0x1de   :  { %v878_v19 = vpop.f32.mrb[11].mxu1 }
 0x1df   :  { %v661_v20 = vadd.f32 %v876_v17, %v1302_v55  ;;  %v879_v21 = vadd.f32 %v878_v19, %v877_v18 }
 0x1e1   :  { %769 = vst.msk [vmem:[%s1469_s5 + $0x30] sm:$0xff] %vm129_vm0, %v661_v20  ;;  %v664_v22 = vadd.f32 %v879_v21, %v1302_v55 }
 0x1e3   :  { %770 = vst.msk [vmem:[%s1469_s5 + $0x38] sm:$0xff] %vm129_vm0, %v664_v22  ;;  %v880_v23 = vpop.f32.mrb[12].mxu1 }
 0x1e4   :  { %v881_v24 = vpop.f32.mrb[13].mxu1 }
 0x1e5   :  { %v882_v25 = vadd.f32 %v881_v24, %v880_v23  ;;  %v883_v26 = vpop.f32.mrb[14].mxu1 }
 0x1e6   :  { %v884_v27 = vpop.f32.mrb[15].mxu1 }
 0x1e7   :  { %v669_v28 = vadd.f32 %v882_v25, %v1302_v55  ;;  %v885_v29 = vadd.f32 %v884_v27, %v883_v26 }
 0x1e9   :  { %771 = vst.msk [vmem:[%s1469_s5 + $0x40] sm:$0xff] %vm129_vm0, %v669_v28  ;;  %v672_v30 = vadd.f32 %v885_v29, %v1302_v55 }
 0x1eb   :  { %772 = vst.msk [vmem:[%s1469_s5 + $0x48] sm:$0xff] %vm129_vm0, %v672_v30  ;;  %v886_v31 = vpop.f32.mrb[16].mxu1 }
 0x1ec   :  { %v887_v32 = vpop.f32.mrb[17].mxu1 }
 0x1ed   :  { %v888_v33 = vadd.f32 %v887_v32, %v886_v31  ;;  %v889_v34 = vpop.f32.mrb[18].mxu1 }
 0x1ee   :  { %v890_v35 = vpop.f32.mrb[19].mxu1 }
 0x1ef   :  { %v677_v36 = vadd.f32 %v888_v33, %v1302_v55  ;;  %v891_v37 = vadd.f32 %v890_v35, %v889_v34 }
 0x1f1   :  { %773 = vst.msk [vmem:[%s1469_s5 + $0x50] sm:$0xff] %vm129_vm0, %v677_v36  ;;  %v680_v38 = vadd.f32 %v891_v37, %v1302_v55 }
 0x1f3   :  { %774 = vst.msk [vmem:[%s1469_s5 + $0x58] sm:$0xff] %vm129_vm0, %v680_v38  ;;  %v892_v39 = vpop.f32.mrb[20].mxu1 }
 0x1f4   :  { %v893_v40 = vpop.f32.mrb[21].mxu1 }
 0x1f5   :  { %v894_v41 = vadd.f32 %v893_v40, %v892_v39  ;;  %v895_v42 = vpop.f32.mrb[22].mxu1 }
 0x1f6   :  { %v896_v43 = vpop.f32.mrb[23].mxu1 }
 0x1f7   :  { %v685_v44 = vadd.f32 %v894_v41, %v1302_v55  ;;  %v897_v45 = vadd.f32 %v896_v43, %v895_v42 }
 0x1f9   :  { %775 = vst.msk [vmem:[%s1469_s5 + $0x60] sm:$0xff] %vm129_vm0, %v685_v44  ;;  %v688_v46 = vadd.f32 %v897_v45, %v1302_v55 }
 0x1fb   :  { %776 = vst.msk [vmem:[%s1469_s5 + $0x68] sm:$0xff] %vm129_vm0, %v688_v46  ;;  %v898_v47 = vpop.f32.mrb[24].mxu1 }
 0x1fc   :  { %v899_v48 = vpop.f32.mrb[25].mxu1 }
 0x1fd   :  { %v900_v49 = vadd.f32 %v899_v48, %v898_v47  ;;  %v901_v50 = vpop.f32.mrb[26].mxu1 }
 0x1fe   :  { %v902_v51 = vpop.f32.mrb[27].mxu1 }
 0x1ff   :  { %v693_v52 = vadd.f32 %v900_v49, %v1302_v55  ;;  %v903_v53 = vadd.f32 %v902_v51, %v901_v50 }
 0x201   :  { %777 = vst.msk [vmem:[%s1469_s5 + $0x70] sm:$0xff] %vm129_vm0, %v693_v52  ;;  %v696_v54 = vadd.f32 %v903_v53, %v1302_v55 }
 0x203   :  { %778 = vst.msk [vmem:[%s1469_s5 + $0x78] sm:$0xff] %vm129_vm0, %v696_v54  ;;  %v904_v56 = vpop.f32.mrb[28].mxu1 }
 0x204   :  { %v905_v1 = vpop.f32.mrb[29].mxu1 }
 0x205   :  { %v906_v57 = vadd.f32 %v905_v1, %v904_v56  ;;  %v907_v58 = vpop.f32.mrb[30].mxu1 }
 0x206   :  { %v908_v15 = vpop.f32.mrb[31].mxu1 }
 0x207   :  { %v701_v59 = vadd.f32 %v906_v57, %v1302_v55  ;;  %v909_v60 = vadd.f32 %v908_v15, %v907_v58 }
 0x209   :  { %779 = vst.msk [vmem:[%s1469_s5 + $0x80] sm:$0xff] %vm129_vm0, %v701_v59  ;;  %v704_v61 = vadd.f32 %v909_v60, %v1302_v55 }
 0x20b   :  { %780 = vst.msk [vmem:[%s1469_s5 + $0x88] sm:$0xff] %vm129_vm0, %v704_v61  ;;  %v910_v62 = vpop.f32.mrb[32].mxu1 }
 0x20c   :  { %v911_v63 = vpop.f32.mrb[33].mxu1 }
 0x20d   :  { %v912_v0 = vadd.f32 %v911_v63, %v910_v62  ;;  %v913_v2 = vpop.f32.mrb[34].mxu1 }
 0x20e   :  { %v914_v3 = vpop.f32.mrb[35].mxu1 }
 0x20f   :  { %v709_v4 = vadd.f32 %v912_v0, %v1302_v55  ;;  %v915_v5 = vadd.f32 %v914_v3, %v913_v2 }
 0x211   :  { %781 = vst.msk [vmem:[%s1469_s5 + $0x90] sm:$0xff] %vm129_vm0, %v709_v4  ;;  %v712_v6 = vadd.f32 %v915_v5, %v1302_v55 }
 0x213   :  { %782 = vst.msk [vmem:[%s1469_s5 + $0x98] sm:$0xff] %vm129_vm0, %v712_v6  ;;  %v916_v7 = vpop.f32.mrb[36].mxu1 }
 0x214   :  { %v917_v8 = vpop.f32.mrb[37].mxu1 }
 0x215   :  { %v918_v9 = vadd.f32 %v917_v8, %v916_v7  ;;  %v919_v10 = vpop.f32.mrb[38].mxu1 }
 0x216   :  { %v920_v11 = vpop.f32.mrb[39].mxu1 }
 0x217   :  { %v717_v12 = vadd.f32 %v918_v9, %v1302_v55  ;;  %v921_v13 = vadd.f32 %v920_v11, %v919_v10 }
 0x219   :  { %783 = vst.msk [vmem:[%s1469_s5 + $0xa0] sm:$0xff] %vm129_vm0, %v717_v12  ;;  %v720_v14 = vadd.f32 %v921_v13, %v1302_v55 }
 0x21b   :  { %784 = vst.msk [vmem:[%s1469_s5 + $0xa8] sm:$0xff] %vm129_vm0, %v720_v14  ;;  %v922_v16 = vpop.f32.mrb[40].mxu1 }
 0x21c   :  { %v923_v17 = vpop.f32.mrb[41].mxu1 }
 0x21d   :  { %v924_v18 = vadd.f32 %v923_v17, %v922_v16  ;;  %v925_v19 = vpop.f32.mrb[42].mxu1 }
 0x21e   :  { %v926_v20 = vpop.f32.mrb[43].mxu1 }
 0x21f   :  { %v725_v21 = vadd.f32 %v924_v18, %v1302_v55  ;;  %v927_v22 = vadd.f32 %v926_v20, %v925_v19 }
 0x221   :  { %785 = vst.msk [vmem:[%s1469_s5 + $0xb0] sm:$0xff] %vm129_vm0, %v725_v21  ;;  %v728_v23 = vadd.f32 %v927_v22, %v1302_v55 }
 0x223   :  { %786 = vst.msk [vmem:[%s1469_s5 + $0xb8] sm:$0xff] %vm129_vm0, %v728_v23  ;;  %v928_v24 = vpop.f32.mrb[44].mxu1 }
 0x224   :  { %v929_v25 = vpop.f32.mrb[45].mxu1 }
 0x225   :  { %v930_v26 = vadd.f32 %v929_v25, %v928_v24  ;;  %v931_v27 = vpop.f32.mrb[46].mxu1 }
 0x226   :  { %v932_v28 = vpop.f32.mrb[47].mxu1 }
 0x227   :  { %v733_v29 = vadd.f32 %v930_v26, %v1302_v55  ;;  %v933_v30 = vadd.f32 %v932_v28, %v931_v27 }
 0x229   :  { %787 = vst.msk [vmem:[%s1469_s5 + $0xc0] sm:$0xff] %vm129_vm0, %v733_v29  ;;  %v736_v31 = vadd.f32 %v933_v30, %v1302_v55 }
 0x22b   :  { %788 = vst.msk [vmem:[%s1469_s5 + $0xc8] sm:$0xff] %vm129_vm0, %v736_v31  ;;  %v934_v32 = vpop.f32.mrb[48].mxu1 }
 0x22c   :  { %v935_v33 = vpop.f32.mrb[49].mxu1 }
 0x22d   :  { %v936_v34 = vadd.f32 %v935_v33, %v934_v32  ;;  %v937_v35 = vpop.f32.mrb[50].mxu1 }
 0x22e   :  { %v938_v36 = vpop.f32.mrb[51].mxu1 }
 0x22f   :  { %v741_v37 = vadd.f32 %v936_v34, %v1302_v55  ;;  %v939_v38 = vadd.f32 %v938_v36, %v937_v35 }
 0x231   :  { %789 = vst.msk [vmem:[%s1469_s5 + $0xd0] sm:$0xff] %vm129_vm0, %v741_v37  ;;  %v744_v39 = vadd.f32 %v939_v38, %v1302_v55 }
 0x233   :  { %790 = vst.msk [vmem:[%s1469_s5 + $0xd8] sm:$0xff] %vm129_vm0, %v744_v39  ;;  %v940_v40 = vpop.f32.mrb[52].mxu1 }
 0x234   :  { %v941_v41 = vpop.f32.mrb[53].mxu1 }
 0x235   :  { %v942_v42 = vadd.f32 %v941_v41, %v940_v40  ;;  %v943_v43 = vpop.f32.mrb[54].mxu1 }
 0x236   :  { %v944_v44 = vpop.f32.mrb[55].mxu1 }
 0x237   :  { %v749_v45 = vadd.f32 %v942_v42, %v1302_v55  ;;  %v945_v46 = vadd.f32 %v944_v44, %v943_v43 }
 0x239   :  { %791 = vst.msk [vmem:[%s1469_s5 + $0xe0] sm:$0xff] %vm129_vm0, %v749_v45  ;;  %v752_v47 = vadd.f32 %v945_v46, %v1302_v55 }
 0x23b   :  { %792 = vst.msk [vmem:[%s1469_s5 + $0xe8] sm:$0xff] %vm129_vm0, %v752_v47  ;;  %v946_v48 = vpop.f32.mrb[56].mxu1 }
 0x23c   :  { %v947_v49 = vpop.f32.mrb[57].mxu1 }
 0x23d   :  { %v948_v50 = vadd.f32 %v947_v49, %v946_v48  ;;  %v949_v51 = vpop.f32.mrb[58].mxu1 }
 0x23e   :  { %v950_v52 = vpop.f32.mrb[59].mxu1 }
 0x23f   :  { %v757_v53 = vadd.f32 %v948_v50, %v1302_v55  ;;  %v951_v54 = vadd.f32 %v950_v52, %v949_v51 }
 0x241   :  { %793 = vst.msk [vmem:[%s1469_s5 + $0xf0] sm:$0xff] %vm129_vm0, %v757_v53  ;;  %v760_v56 = vadd.f32 %v951_v54, %v1302_v55 }
 0x243   :  { %794 = vst.msk [vmem:[%s1469_s5 + $0xf8] sm:$0xff] %vm129_vm0, %v760_v56 }

</bundles_post_ra>
